<compile_context>
chip_gen: v6e
topology: v6e:2x2x1
jax: 0.10.0
libtpu: 0.0.40
codegen_flags: <defaults>
</compile_context>

<pallas_src>
import numpy as np
import jax
import jax.numpy as jnp
from jax.experimental import pallas as pl
from jax.experimental.pallas import tpu as pltpu

LEAKY_SLOPE = 0.01  # nn.LeakyReLU() default negative_slope


def _bdot(a, b):
    # bf16 operands, f32 accumulation: single-pass MXU path on all TPU generations.
    return jnp.dot(a.astype(jnp.bfloat16), b.astype(jnp.bfloat16),
                   preferred_element_type=jnp.float32)


def fused_encoder_kernel(x_ref, pq_ref, w_ref, bias_ref, o_ref):
    """Fused HGCN encoder forward (everything resident in VMEM).

    x_ref    : (N, 128)       bf16  node features, lane-padded
    pq_ref   : (N + 8, N)     f32   rows [0:N] = P,  rows [N:N+8] = Q = H^T_pad @ P
    w_ref    : (L, 128, 128)  bf16  L-1 hidden conv weights + merged mu||logvar head
    bias_ref : (2, 8, 128)    f32   [0, i] = hidden bias i,  [1] = pooled head bias
    o_ref    : (8, 128)       f32   rows [:M]: cols [:C] = mu, cols [C:2C] = logvar
    """
    n = x_ref.shape[0]
    num_hidden = w_ref.shape[0] - 1

    p = pq_ref[0:n, :]            # (N, N) normalized propagation matrix
    q = pq_ref[n:n + 8, :]        # (8, N) pooling folded with propagation
    biases = bias_ref[...]        # (2, 8, 128)

    hx = x_ref[...]               # (N, 128) bf16
    # Hidden HypergraphConv layers: hx = P @ (hx @ W_i) + b_i, LeakyReLU between
    # hidden layers (matches the torch forward: activation after every hidden conv
    # except the last; no activation before the mu/logvar heads).
    for i in range(num_hidden):
        xw = _bdot(hx, w_ref[i])                 # (N, 128)
        hx = _bdot(p, xw) + biases[0, i]         # (N, 128) f32
        if i < num_hidden - 1:
            hx = jnp.where(hx >= 0.0, hx, LEAKY_SLOPE * hx)

    # Fused mu||logvar head + hyperedge pooling:
    #   out = H^T (P (hx @ W_head) + b_head) = Q @ (hx @ W_head) + b_pool
    xw = _bdot(hx, w_ref[num_hidden])            # (N, 128)
    o_ref[...] = _bdot(q, xw) + biases[1]        # (8, 128), lane-dense store


def hgcn_encoder_fused(x_pad, pq, w_slab, bias_slab):
    n, c = x_pad.shape
    num_layers = w_slab.shape[0]
    m_pad = 8
    flops = (num_layers * 2 * n * c * c            # X @ W for every layer
             + (num_layers - 1) * 2 * n * n * c    # P @ XW for hidden layers
             + 2 * m_pad * n * c)                  # Q @ XW (head + pooling)
    bytes_accessed = (x_pad.size * x_pad.dtype.itemsize
                      + pq.size * pq.dtype.itemsize
                      + w_slab.size * w_slab.dtype.itemsize
                      + bias_slab.size * bias_slab.dtype.itemsize
                      + m_pad * c * 4)
    vmem = pl.BlockSpec(memory_space=pltpu.MemorySpace.VMEM)
    return pl.pallas_call(
        fused_encoder_kernel,
        out_shape=jax.ShapeDtypeStruct((m_pad, c), jnp.float32),
        in_specs=[vmem, vmem, vmem, vmem],
        out_specs=vmem,
        cost_estimate=pl.CostEstimate(flops=flops, transcendentals=0,
                                      bytes_accessed=bytes_accessed),
    )(x_pad, pq, w_slab, bias_slab)


if __name__ == "__main__":
    # ---- small synthetic problem -------------------------------------------
    N = 16                       # number of nodes
    in_channels = 8
    hidden_channels = (16, 32)   # hconv_0: 8->16 (then LeakyReLU), hconv_1: 16->32
    hyperedges = [[1, 2, 3, 4], [3, 5, 6], [7, 8, 9, 10, 11],
                  [12, 13], [14, 15, 16, 1]]   # 1-indexed, as in the module
    M = len(hyperedges)
    M_PAD = 8                    # pad pooled rows up to one f32 sublane tile
    C_LAST = hidden_channels[-1]
    C_PAD = 128                  # lane-dense channel width (>= 2 * C_LAST)
    num_hidden = len(hidden_channels)

    # Incidence matrix, normalizations, propagation matrix P, folded pooling Q.
    H_np = np.zeros((N, M), dtype=np.float32)
    for e_idx, nodes in enumerate(hyperedges):
        for v in nodes:
            H_np[v - 1, e_idx] = 1.0
    D = H_np.sum(axis=1)
    B = H_np.sum(axis=0)
    Dinv = np.where(D > 0, 1.0 / np.maximum(D, 1e-12), 0.0).astype(np.float32).reshape(N, 1)
    Binv = np.where(B > 0, 1.0 / np.maximum(B, 1e-12), 0.0).astype(np.float32).reshape(M, 1)
    P_np = (Dinv * H_np) @ (Binv * H_np.T)          # (N, N), reused by all layers
    HT_pad = np.zeros((M_PAD, N), dtype=np.float32)
    HT_pad[:M] = H_np.T
    Q_np = HT_pad @ P_np                            # (M_PAD, N): pooling @ propagation
    edge_size_pad = HT_pad.sum(axis=1)              # (M_PAD,) |e|, 0 on pad rows

    pq = jnp.asarray(np.concatenate([P_np, Q_np], axis=0))   # (N + 8, N) f32

    # ---- deterministic parameter init --------------------------------------
    key = jax.random.PRNGKey(0)

    def make_linear(k, cin, cout):
        kw, kb = jax.random.split(k)
        scale = 1.0 / np.sqrt(cin)
        w = jax.random.uniform(kw, (cin, cout), jnp.float32, -scale, scale)
        b = jax.random.uniform(kb, (1, cout), jnp.float32, -scale, scale)
        return w, b

    dims = [in_channels] + list(hidden_channels)
    layer_dims = list(zip(dims[:-1], dims[1:]))                 # hconv_0 .. hconv_{L-1}
    layer_dims += [(C_LAST, C_LAST), (C_LAST, C_LAST)]          # hconv_mu, hconv_logvar
    keys = jax.random.split(key, len(layer_dims) + 1)
    x = jax.random.normal(keys[0], (N, in_channels), jnp.float32)
    layers = [make_linear(keys[i + 1], cin, cout)
              for i, (cin, cout) in enumerate(layer_dims)]
    hidden_layers = layers[:num_hidden]
    (w_mu, b_mu), (w_lv, b_lv) = layers[-2], layers[-1]

    # Pack weights into ONE lane-dense bf16 slab: hidden convs + merged mu||logvar head.
    w_slab = np.zeros((num_hidden + 1, C_PAD, C_PAD), dtype=np.float32)
    for i, (w, _) in enumerate(hidden_layers):
        cin, cout = w.shape
        w_slab[i, :cin, :cout] = np.asarray(w)
    w_slab[num_hidden, :C_LAST, :C_LAST] = np.asarray(w_mu)
    w_slab[num_hidden, :C_LAST, C_LAST:2 * C_LAST] = np.asarray(w_lv)
    w_slab = jnp.asarray(w_slab, dtype=jnp.bfloat16)

    # Pack biases into ONE f32 slab: [0, i] = hidden bias i; [1] = pooled head bias.
    bias_slab = np.zeros((2, M_PAD, C_PAD), dtype=np.float32)
    for i, (_, b) in enumerate(hidden_layers):
        bias_slab[0, i, :b.shape[1]] = np.asarray(b)[0]
    b_head = np.zeros((C_PAD,), dtype=np.float32)
    b_head[:C_LAST] = np.asarray(b_mu)[0]
    b_head[C_LAST:2 * C_LAST] = np.asarray(b_lv)[0]
    bias_slab[1] = edge_size_pad[:, None] * b_head[None, :]    # H^T @ broadcast bias
    bias_slab = jnp.asarray(bias_slab)

    # Lane-pad node features to 128 and cast to bf16.
    x_pad_np = np.zeros((N, C_PAD), dtype=np.float32)
    x_pad_np[:, :in_channels] = np.asarray(x)
    x_pad = jnp.asarray(x_pad_np, dtype=jnp.bfloat16)

    # ---- forward pass: ONE fused pallas_call --------------------------------
    @jax.jit
    def forward(xp):
        out = hgcn_encoder_fused(xp, pq, w_slab, bias_slab)
        mu_p = out[:M, :C_LAST]
        logvar_p = out[:M, C_LAST:2 * C_LAST]
        return mu_p, logvar_p

    mu_out, logvar_out = forward(x_pad)
    jax.block_until_ready((mu_out, logvar_out))

    # ---- pure numpy f32 reference (original factored formulation) -----------
    def ref_conv(xv, w, b):
        xw = xv @ np.asarray(w)
        e = Binv * (H_np.T @ xw)
        return Dinv * (H_np @ e) + np.asarray(b)

    xr = np.asarray(x)
    for i, (w, b) in enumerate(hidden_layers):
        xr = ref_conv(xr, w, b)
        if i < num_hidden - 1:                       # LeakyReLU between hidden convs
            xr = np.where(xr >= 0, xr, LEAKY_SLOPE * xr)
    mu_ref = H_np.T @ ref_conv(xr, w_mu, b_mu)
    lv_ref = H_np.T @ ref_conv(xr, w_lv, b_lv)

    assert mu_out.shape == (M, C_LAST)
    assert logvar_out.shape == (M, C_LAST)
    # bf16 operands with f32 accumulation -> looser tolerance than pure f32.
    np.testing.assert_allclose(np.asarray(mu_out), mu_ref, rtol=3e-2, atol=3e-2)
    np.testing.assert_allclose(np.asarray(logvar_out), lv_ref, rtol=3e-2, atol=3e-2)

    print("KERNEL_OK")
</pallas_src>

<mosaic_0001>
module attributes {stable_mosaic.version = 11 : i64} {
  func.func @fused_encoder_kernel(%arg0: memref<16x128xbf16, #tpu.memory_space<vmem>>, %arg1: memref<24x16xf32, #tpu.memory_space<vmem>>, %arg2: memref<3x128x128xbf16, #tpu.memory_space<vmem>>, %arg3: memref<2x8x128xf32, #tpu.memory_space<vmem>>, %arg4: memref<8x128xf32, #tpu.memory_space<vmem>>) attributes {dimension_semantics = [], scalar_prefetch = 0 : i64, scratch_operands = 0 : i64, tpu.core_type = #tpu.core_type<tc>} {
    %c0 = arith.constant 0 : index
    %c0_0 = arith.constant 0 : index
    %0 = vector.load %arg1[%c0, %c0_0] : memref<24x16xf32, #tpu.memory_space<vmem>>, vector<16x16xf32>
    %c16 = arith.constant 16 : index
    %c0_1 = arith.constant 0 : index
    %1 = vector.load %arg1[%c16, %c0_1] : memref<24x16xf32, #tpu.memory_space<vmem>>, vector<8x16xf32>
    %c0_2 = arith.constant 0 : index
    %c0_3 = arith.constant 0 : index
    %c0_4 = arith.constant 0 : index
    %2 = vector.load %arg3[%c0_2, %c0_3, %c0_4] : memref<2x8x128xf32, #tpu.memory_space<vmem>>, vector<2x8x128xf32>
    %c0_5 = arith.constant 0 : index
    %c0_6 = arith.constant 0 : index
    %3 = vector.load %arg0[%c0_5, %c0_6] : memref<16x128xbf16, #tpu.memory_space<vmem>>, vector<16x128xbf16>
    %c0_7 = arith.constant 0 : index
    %c0_8 = arith.constant 0 : index
    %c0_9 = arith.constant 0 : index
    %4 = vector.load %arg2[%c0_7, %c0_8, %c0_9] : memref<3x128x128xbf16, #tpu.memory_space<vmem>>, vector<1x128x128xbf16>
    %5 = vector.shape_cast %4 : vector<1x128x128xbf16> to vector<128x128xbf16>
    %cst = arith.constant dense<0.000000e+00> : vector<16x128xf32>
    %6 = tpu.matmul %3, %5, %cst {dimension_numbers = #tpu.dot_dimension_numbers<[1], [0], [0], [1], [0, 0, 1, 1], [], []>} : vector<16x128xbf16>, vector<128x128xbf16>, vector<16x128xf32> -> vector<16x128xf32>
    %7 = arith.truncf %0 : vector<16x16xf32> to vector<16x16xbf16>
    %8 = arith.truncf %6 : vector<16x128xf32> to vector<16x128xbf16>
    %cst_10 = arith.constant dense<0.000000e+00> : vector<16x128xf32>
    %9 = tpu.matmul %7, %8, %cst_10 {dimension_numbers = #tpu.dot_dimension_numbers<[1], [0], [0], [1], [0, 0, 1, 1], [], []>} : vector<16x16xbf16>, vector<16x128xbf16>, vector<16x128xf32> -> vector<16x128xf32>
    %10 = vector.extract_strided_slice %2 {offsets = [0, 0, 0], sizes = [1, 1, 128], strides = [1, 1, 1]} : vector<2x8x128xf32> to vector<1x1x128xf32>
    %11 = vector.shape_cast %10 : vector<1x1x128xf32> to vector<128xf32>
    %12 = vector.shape_cast %11 : vector<128xf32> to vector<1x128xf32>
    %13 = vector.broadcast %12 : vector<1x128xf32> to vector<16x128xf32>
    %14 = arith.addf %9, %13 : vector<16x128xf32>
    %cst_11 = arith.constant 0.000000e+00 : f32
    %15 = vector.broadcast %cst_11 : f32 to vector<16x128xf32>
    %16 = arith.cmpf oge, %14, %15 : vector<16x128xf32>
    %cst_12 = arith.constant 0.00999999977 : f32
    %17 = vector.broadcast %cst_12 : f32 to vector<16x128xf32>
    %18 = arith.mulf %17, %14 : vector<16x128xf32>
    %19 = arith.select %16, %14, %18 : vector<16x128xi1>, vector<16x128xf32>
    %c1 = arith.constant 1 : index
    %c0_13 = arith.constant 0 : index
    %c0_14 = arith.constant 0 : index
    %20 = vector.load %arg2[%c1, %c0_13, %c0_14] : memref<3x128x128xbf16, #tpu.memory_space<vmem>>, vector<1x128x128xbf16>
    %21 = vector.shape_cast %20 : vector<1x128x128xbf16> to vector<128x128xbf16>
    %22 = arith.truncf %19 : vector<16x128xf32> to vector<16x128xbf16>
    %cst_15 = arith.constant dense<0.000000e+00> : vector<16x128xf32>
    %23 = tpu.matmul %22, %21, %cst_15 {dimension_numbers = #tpu.dot_dimension_numbers<[1], [0], [0], [1], [0, 0, 1, 1], [], []>} : vector<16x128xbf16>, vector<128x128xbf16>, vector<16x128xf32> -> vector<16x128xf32>
    %24 = arith.truncf %0 : vector<16x16xf32> to vector<16x16xbf16>
    %25 = arith.truncf %23 : vector<16x128xf32> to vector<16x128xbf16>
    %cst_16 = arith.constant dense<0.000000e+00> : vector<16x128xf32>
    %26 = tpu.matmul %24, %25, %cst_16 {dimension_numbers = #tpu.dot_dimension_numbers<[1], [0], [0], [1], [0, 0, 1, 1], [], []>} : vector<16x16xbf16>, vector<16x128xbf16>, vector<16x128xf32> -> vector<16x128xf32>
    %27 = vector.extract_strided_slice %2 {offsets = [0, 1, 0], sizes = [1, 1, 128], strides = [1, 1, 1]} : vector<2x8x128xf32> to vector<1x1x128xf32>
    %28 = vector.shape_cast %27 : vector<1x1x128xf32> to vector<128xf32>
    %29 = vector.shape_cast %28 : vector<128xf32> to vector<1x128xf32>
    %30 = vector.broadcast %29 : vector<1x128xf32> to vector<16x128xf32>
    %31 = arith.addf %26, %30 : vector<16x128xf32>
    %c2 = arith.constant 2 : index
    %c0_17 = arith.constant 0 : index
    %c0_18 = arith.constant 0 : index
    %32 = vector.load %arg2[%c2, %c0_17, %c0_18] : memref<3x128x128xbf16, #tpu.memory_space<vmem>>, vector<1x128x128xbf16>
    %33 = vector.shape_cast %32 : vector<1x128x128xbf16> to vector<128x128xbf16>
    %34 = arith.truncf %31 : vector<16x128xf32> to vector<16x128xbf16>
    %cst_19 = arith.constant dense<0.000000e+00> : vector<16x128xf32>
    %35 = tpu.matmul %34, %33, %cst_19 {dimension_numbers = #tpu.dot_dimension_numbers<[1], [0], [0], [1], [0, 0, 1, 1], [], []>} : vector<16x128xbf16>, vector<128x128xbf16>, vector<16x128xf32> -> vector<16x128xf32>
    %36 = arith.truncf %1 : vector<8x16xf32> to vector<8x16xbf16>
    %37 = arith.truncf %35 : vector<16x128xf32> to vector<16x128xbf16>
    %cst_20 = arith.constant dense<0.000000e+00> : vector<8x128xf32>
    %38 = tpu.matmul %36, %37, %cst_20 {dimension_numbers = #tpu.dot_dimension_numbers<[1], [0], [0], [1], [0, 0, 1, 1], [], []>} : vector<8x16xbf16>, vector<16x128xbf16>, vector<8x128xf32> -> vector<8x128xf32>
    %39 = vector.extract_strided_slice %2 {offsets = [1, 0, 0], sizes = [1, 8, 128], strides = [1, 1, 1]} : vector<2x8x128xf32> to vector<1x8x128xf32>
    %40 = vector.shape_cast %39 : vector<1x8x128xf32> to vector<8x128xf32>
    %41 = arith.addf %38, %40 : vector<8x128xf32>
    %c0_21 = arith.constant 0 : index
    %c0_22 = arith.constant 0 : index
    %42 = vector.load %arg4[%c0_21, %c0_22] : memref<8x128xf32, #tpu.memory_space<vmem>>, vector<8x128xf32>
    tpu.vector_store %arg4[%c0_21, %c0_22], %41 {strides = array<i32>} : memref<8x128xf32, #tpu.memory_space<vmem>>, vector<8x128xf32>,
    return
  }
}

</mosaic_0001>

<bundles_post_ra>
// kernel: forward.1
= control target key start
LH: loop header
LB: loop body
LE: loop exit
PB: predicated region body
PF: predicated region fallthrough
CT: control target
= control target key end

     0   :  { %9 = vsyncpa [#allocation3], 0  ;;  %s919_s0 = inlined_call_operand.hbm [shape: bf16[16,128], index: 0, kind: input, shape index: {}]   ;;  %s920_s1 = inlined_call_operand.hbm [shape: f32[24,16], index: 1, kind: input, shape index: {}]   ;;  %s921_s2 = inlined_call_operand.hbm [shape: bf16[3,128,128], index: 2, kind: input, shape index: {}]   ;;  %s922_s3 = inlined_call_operand.hbm [shape: f32[2,8,128], index: 3, kind: input, shape index: {}]   ;;  %s923_s4 = inlined_call_operand.vmem [shape: f32[8,128], index: 4, kind: output, shape index: {}]  }
   0x1   :  { %10 = vsyncpa [#allocation5], 0 }
   0x2   :  { %11 = vsyncpa [#allocation8], 0  ;;  %s821_s15 = smov [#allocation4]  }
   0x3   :  { %s29_s16 = sshll.u32 %s821_s15, 4  ;;  %s30_s16 = int_to_ptr.vmem [resolvable:$true] %s29_s16 }
   0x4   :  { %s743_s17 = scalar_lea.vmem %s30_s16, 384  ;;  %p748_p1 = scmp.lt.s32.totalorder %s30_s16, %s30_s16 }
   0x5   :  { %p744_p0 = scmp.ne.s32.totalorder %s30_s16, %s743_s17  ;;  %p749_p2 = scmp.lt.s32.totalorder %s743_s17, %s743_s17 }
   0x7   :  { %p750_p3 = por %p749_p2, %p748_p1 }
   0x9   :  { %p751_p4 = pnand %p750_p3, %p744_p0 }
   0xb   :  { %754 = shalt.err (!%p751_p4)
}
   0xc   :  { %s822_s18 = smov 128   ;;  %s823_s19 = smov 8  }
   0xd   :  { %35 = dma.hbm_to_vmem [thread:$0]  %s920_s1, 384, %s30_s16, [#allocation5], %s822_s18, %s822_s18, %s823_s19  }
   0xe   :  { %s824_s22 = smov [#allocation2]  }
   0xf   :  { %s17_s23 = sshll.u32 %s824_s22, 4  ;;  %s18_s23 = int_to_ptr.vmem [resolvable:$true] %s17_s23 }
  0x10   :  { %s763_s24 = scalar_lea.vmem %s18_s23, 128  ;;  %p768_p6 = scmp.lt.s32.totalorder %s18_s23, %s18_s23 }
  0x11   :  { %p764_p5 = scmp.ne.s32.totalorder %s18_s23, %s763_s24  ;;  %p769_p7 = scmp.lt.s32.totalorder %s763_s24, %s763_s24 }
  0x13   :  { %p770_p8 = por %p769_p7, %p768_p6 }
  0x15   :  { %p771_p9 = pnand %p770_p8, %p764_p5 }
  0x17   :  { %774 = shalt.err (!%p771_p9)
}
  0x18   :  { %s825_s25 = smov 64   ;;  %s826_s26 = smov 4  }
  0x19   :  { %23 = dma.hbm_to_vmem [thread:$0]  %s919_s0, 128, %s18_s23, [#allocation3], %s825_s25, %s825_s25, %s826_s26  }
  0x1a   :  { %s827_s29 = smov [#allocation6]   ;;  %s828_s5 = smov [#allocation7]  }
  0x1b   :  { %s41_s30 = sshll.u32 %s827_s29, 4  ;;  %s53_s1 = sshll.u32 %s828_s5, 4  ;;  %s42_s30 = int_to_ptr.vmem [resolvable:$true] %s41_s30  ;;  %s54_s1 = int_to_ptr.vmem [resolvable:$true] %s53_s1 }
  0x1c   :  { %s783_s6 = scalar_lea.vmem %s42_s30, 3072  ;;  %p788_p11 = scmp.lt.s32.totalorder %s42_s30, %s42_s30 }
  0x1d   :  { %p784_p10 = scmp.ne.s32.totalorder %s42_s30, %s783_s6  ;;  %p789_p12 = scmp.lt.s32.totalorder %s783_s6, %s783_s6 }
  0x1f   :  { %p790_p13 = por %p789_p12, %p788_p11 }
  0x21   :  { %p791_p0 = pnand %p790_p13, %p784_p10 }
  0x23   :  { %794 = shalt.err (!%p791_p0)
}
  0x24   :  { %47 = dma.hbm_to_vmem [thread:$0]  %s921_s2, 3072, %s42_s30, [#allocation5], %s825_s25, %s825_s25, %s826_s26  }
  0x25   :  { %s803_s9 = scalar_lea.vmem %s54_s1, 256  ;;  %p808_p2 = scmp.lt.s32.totalorder %s54_s1, %s54_s1 }
  0x26   :  { %p804_p1 = scmp.ne.s32.totalorder %s54_s1, %s803_s9  ;;  %p809_p3 = scmp.lt.s32.totalorder %s803_s9, %s803_s9 }
  0x28   :  { %p810_p4 = por %p809_p3, %p808_p2 }
  0x2a   :  { %p811_p5 = pnand %p810_p4, %p804_p1 }
  0x2c   :  { %814 = shalt.err (!%p811_p5)
}
  0x2d   :  { %59 = dma.hbm_to_vmem [thread:$0]  %s922_s3, 256, %s54_s1, [#allocation8], %s822_s18, %s822_s18, %s823_s19  }
  0x2e   :  { %815 = dma.done.wait [#allocation3], 128  }
  0x2f   :  { %816 = vsyncadd [#allocation3], 4294967168 }
  0x30   :  { %817 = dma.done.wait [#allocation5], 3456  }
  0x31   :  { %818 = vsyncadd [#allocation5], 4294963840 }
  0x32   :  { %819 = dma.done.wait [#allocation8], 256  }
  0x33   :  { %820 = vsyncadd [#allocation8], 4294967040  ;;  %v829_v0 = vmov 0.0   ;;  %vm830_vm0 = vmmov 0   ;;  %v710_v1 = vld [vmem:[#allocation6 + $0x38] sm:$0xff]   ;;  %v711_v2 = vld [vmem:[#allocation6 + $0x30] sm:$0xff]   ;;  %v193_v26 = vlaneseq }
  0x34   :  { %622 = vmatprep.subr.bf16.mxu0 %v829_v0  ;;  %638 = vmatprep.mubr.msk.bf16.mxu0 %vm830_vm0, %v829_v0  ;;  %v712_v3 = vld [vmem:[#allocation6 + $0x28] sm:$0xff]   ;;  %v713_v4 = vld [vmem:[#allocation6 + $0x20] sm:$0xff]   ;;  %v714_v5 = vld [vmem:[#allocation6 + $0x18] sm:$0xff]   ;;  %vm197_vm1 = vcmask 130048  }
  0x35   :  { %648 = vmatprep.subr.bf16.mxu1 %v829_v0  ;;  %664 = vmatprep.mubr.msk.bf16.mxu1 %vm830_vm0, %v829_v0  ;;  %v715_v6 = vld [vmem:[#allocation6 + $0x10] sm:$0xff]   ;;  %v716_v7 = vld [vmem:[#allocation6 + $0x8] sm:$0xff]   ;;  %v717_v8 = vld [vmem:[#allocation6] sm:$0xff]   ;;  %v194_v27 = vshrl.u32 %v193_v26, 7 }
  0x36   :  { %623 = vmatpush3.bf16.msra.mxu0 %v710_v1  ;;  %v718_v9 = vld [vmem:[#allocation2] sm:$0xff]   ;;  %v719_v10 = vld [vmem:[#allocation6 + $0x78] sm:$0xff]   ;;  %v720_v11 = vld [vmem:[#allocation6 + $0x70] sm:$0xff]  }
  0x37   :  { %624 = vmatprep.subr.bf16.mxu0 %v829_v0  ;;  %649 = vmatpush3.bf16.msra.mxu1 %v719_v10  ;;  %v721_v12 = vld [vmem:[#allocation6 + $0x68] sm:$0xff]   ;;  %v722_v13 = vld [vmem:[#allocation6 + $0x60] sm:$0xff]   ;;  %v723_v14 = vld [vmem:[#allocation6 + $0x58] sm:$0xff]   ;;  %v195_v28 = vsub.s32 0, %v194_v27  ;;  %v358_v55 = vsub.s32 1, %v194_v27 }
  0x38   :  { %650 = vmatprep.subr.bf16.mxu1 %v829_v0  ;;  %v73_v17 = vld [vmem:[#allocation4] sm:$0xff]  ;;  %v74_v18 = vld [vmem:[#allocation4 + $0x8] sm:$0xff]  ;;  %v726_v25 = vld [vmem:[#allocation6 + $0x40] sm:$0xff]  }
  0x39   :  { %v191_v22 = vpack.c.bf16 %v74_v18, %v73_v17  ;;  %v724_v23 = vld [vmem:[#allocation6 + $0x50] sm:$0xff]   ;;  %v725_v24 = vld [vmem:[#allocation6 + $0x48] sm:$0xff]   ;;  %v76_v29 = vld [vmem:[#allocation7] sm:$0xff] }
  0x3a   :  { %625 = vmatpush3.bf16.msra.mxu0 %v711_v2  ;;  %v196_v30 = vrot.slane %v76_v29, %v195_v28  ;;  %v727_v42 = vld [vmem:[#allocation6 + $0xb8] sm:$0xff]   ;;  %v728_v43 = vld [vmem:[#allocation6 + $0xb0] sm:$0xff]   ;;  %v729_v44 = vld [vmem:[#allocation6 + $0xa8] sm:$0xff]   ;;  %v359_v57 = vrot.slane %v76_v29, %v358_v55 }
  0x3b   :  { %626 = vmatprep.subr.bf16.mxu0 %v829_v0  ;;  %651 = vmatpush3.bf16.msra.mxu1 %v720_v11  ;;  %v730_v45 = vld [vmem:[#allocation6 + $0xa0] sm:$0xff]   ;;  %v731_v46 = vld [vmem:[#allocation6 + $0x98] sm:$0xff]   ;;  %v732_v47 = vld [vmem:[#allocation6 + $0x90] sm:$0xff]  }
  0x3c   :  { %652 = vmatprep.subr.bf16.mxu1 %v829_v0  ;;  %v733_v53 = vld [vmem:[#allocation6 + $0x88] sm:$0xff]   ;;  %v734_v54 = vld [vmem:[#allocation6 + $0x80] sm:$0xff]  }
  0x3e   :  { %627 = vmatpush3.bf16.msra.mxu0 %v712_v3  ;;  %v75_v3 = vld [vmem:[#allocation4 + $0x10] sm:$0xff] }
  0x3f   :  { %628 = vmatprep.subr.bf16.mxu0 %v829_v0  ;;  %653 = vmatpush3.bf16.msra.mxu1 %v721_v12 }
  0x40   :  { %654 = vmatprep.subr.bf16.mxu1 %v829_v0 }
  0x42   :  { %629 = vmatpush3.bf16.msra.mxu0 %v713_v4 }
  0x43   :  { %630 = vmatprep.subr.bf16.mxu0 %v829_v0  ;;  %655 = vmatpush3.bf16.msra.mxu1 %v722_v13 }
  0x44   :  { %656 = vmatprep.subr.bf16.mxu1 %v829_v0 }
  0x46   :  { %631 = vmatpush3.bf16.msra.mxu0 %v714_v5 }
  0x47   :  { %632 = vmatprep.subr.bf16.mxu0 %v829_v0  ;;  %657 = vmatpush3.bf16.msra.mxu1 %v723_v14 }
  0x48   :  { %658 = vmatprep.subr.bf16.mxu1 %v829_v0 }
  0x4a   :  { %633 = vmatpush3.bf16.msra.mxu0 %v715_v6 }
  0x4b   :  { %634 = vmatprep.subr.bf16.mxu0 %v829_v0  ;;  %659 = vmatpush3.bf16.msra.mxu1 %v724_v23 }
  0x4c   :  { %660 = vmatprep.subr.bf16.mxu1 %v829_v0 }
  0x4e   :  { %635 = vmatpush3.bf16.msra.mxu0 %v716_v7  ;;  %v508_v7 = vpack.c.bf16 %v75_v3, %v75_v3 }
  0x4f   :  { %636 = vmatprep.subr.bf16.mxu0 %v829_v0  ;;  %661 = vmatpush3.bf16.msra.mxu1 %v725_v24 }
  0x50   :  { %662 = vmatprep.subr.bf16.mxu1 %v829_v0 }
  0x52   :  { %637 = vmatpush3.bf16.msra.mxu0 %v717_v8 }
  0x53   :  { %642 = vmatprep.subr.bf16.mxu0 %v829_v0  ;;  %663 = vmatpush3.bf16.msra.mxu1 %v726_v25 }
  0x54   :  { %674 = vmatprep.subr.bf16.mxu1 %v829_v0 }
  0x55   :  { %639 = vmatmul.mubr.bf16.vlgmr.msra.gmra.mxu0 %v718_v9 }
  0x56   :  { %644 = vmatprep.mubr.msk.bf16.mxu0 %vm830_vm0, %v829_v0 }
 0x115   :  { %v184_v15 = vpop.f32.mrf.mxu0 }
 0x117   :  { %v640_v16 = vpop.f32.mrf.mxu0 }
 0x119   :  { %v187_v19 = vpop.f32.mrf.mxu0 }
 0x11a   :  { %v192_v20 = vpack.c.bf16 %v187_v19, %v184_v15 }
 0x11b   :  { %v641_v21 = vpop.f32.mrf.mxu0 }
 0x11c   :  { %643 = vmatpush3.bf16.msra.mxu0 %v192_v20 }
 0x11d   :  { %668 = vmatprep.subr.bf16.mxu0 %v829_v0 }
 0x11f   :  { %645 = vmatmul.mubr.msk.bf16.vlgmr.msra.gmra.mxu0 %vm197_vm1, %v191_v22 }
 0x120   :  { %670 = vmatprep.mubr.msk.bf16.mxu0 %vm830_vm0, %v829_v0 }
 0x1df   :  { %v235_v31 = vpop.f32.mrf.mxu0 }
 0x1e0   :  { %v236_v32 = vadd.f32 %v235_v31, %v196_v30 }
 0x1e1   :  { %v646_v33 = vpop.f32.mrf.mxu0 }
 0x1e2   :  { %v244_v35 = vmul.f32 0.01, %v236_v32  ;;  %vm242_vm2 = vcmp.ge.f32.partialorder %v236_v32, 0.0 }
 0x1e3   :  { %v238_v34 = vpop.f32.mrf.mxu0 }
 0x1e4   :  { %v239_v36 = vadd.f32 %v238_v34, %v196_v30  ;;  %v246_v39 = vsel %vm242_vm2, %v236_v32, %v244_v35 }
 0x1e5   :  { %v647_v37 = vpop.f32.mrf.mxu0 }
 0x1e6   :  { %vm243_vm3 = vcmp.ge.f32.partialorder %v239_v36, 0.0  ;;  %v245_v38 = vmul.f32 0.01, %v239_v36 }
 0x1e8   :  { %v247_v40 = vsel %vm243_vm3, %v239_v36, %v245_v38 }
 0x1e9   :  { %v265_v41 = vpack.c.bf16 %v247_v40, %v246_v39 }
 0x1eb   :  { %665 = vmatmul.mubr.bf16.vlgmr.msra.gmra.mxu1 %v265_v41 }
 0x1ec   :  { %690 = vmatprep.mubr.msk.bf16.mxu1 %vm830_vm0, %v829_v0  ;;  %675 = vmatpush3.bf16.msra.mxu1 %v727_v42 }
 0x1ed   :  { %676 = vmatprep.subr.bf16.mxu1 %v829_v0 }
 0x1f0   :  { %677 = vmatpush3.bf16.msra.mxu1 %v728_v43 }
 0x1f1   :  { %678 = vmatprep.subr.bf16.mxu1 %v829_v0 }
 0x1f4   :  { %679 = vmatpush3.bf16.msra.mxu1 %v729_v44 }
 0x1f5   :  { %680 = vmatprep.subr.bf16.mxu1 %v829_v0 }
 0x1f8   :  { %681 = vmatpush3.bf16.msra.mxu1 %v730_v45 }
 0x1f9   :  { %682 = vmatprep.subr.bf16.mxu1 %v829_v0 }
 0x1fc   :  { %683 = vmatpush3.bf16.msra.mxu1 %v731_v46 }
 0x1fd   :  { %684 = vmatprep.subr.bf16.mxu1 %v829_v0 }
 0x200   :  { %685 = vmatpush3.bf16.msra.mxu1 %v732_v47 }
 0x201   :  { %686 = vmatprep.subr.bf16.mxu1 %v829_v0 }
 0x204   :  { %687 = vmatpush3.bf16.msra.mxu1 %v733_v53 }
 0x205   :  { %688 = vmatprep.subr.bf16.mxu1 %v829_v0 }
 0x208   :  { %689 = vmatpush3.bf16.msra.mxu1 %v734_v54 }
 0x2ab   :  { %v348_v48 = vpop.f32.mrf.mxu1 }
 0x2ad   :  { %v666_v49 = vpop.f32.mrf.mxu1 }
 0x2af   :  { %v351_v50 = vpop.f32.mrf.mxu1 }
 0x2b0   :  { %v355_v51 = vpack.c.bf16 %v351_v50, %v348_v48 }
 0x2b1   :  { %v667_v52 = vpop.f32.mrf.mxu1 }
 0x2b2   :  { %669 = vmatpush3.bf16.msra.mxu0 %v355_v51 }
 0x2b3   :  { %694 = vmatprep.subr.bf16.mxu0 %v829_v0 }
 0x2b5   :  { %671 = vmatmul.mubr.msk.bf16.vlgmr.msra.gmra.mxu0 %vm197_vm1, %v191_v22 }
 0x2b6   :  { %696 = vmatprep.mubr.msk.bf16.mxu0 %vm830_vm0, %v829_v0  ;;  %v77_v0 = vld [vmem:[#allocation7 + $0x8] sm:$0xff] }
 0x375   :  { %v394_v56 = vpop.f32.mrf.mxu0 }
 0x376   :  { %v395_v60 = vadd.f32 %v394_v56, %v359_v57 }
 0x377   :  { %v672_v58 = vpop.f32.mrf.mxu0 }
 0x379   :  { %v397_v59 = vpop.f32.mrf.mxu0 }
 0x37a   :  { %v398_v61 = vadd.f32 %v397_v59, %v359_v57 }
 0x37b   :  { %v673_v62 = vpop.f32.mrf.mxu0 }
 0x37c   :  { %v418_v63 = vpack.c.bf16 %v398_v61, %v395_v60 }
 0x37e   :  { %691 = vmatmul.mubr.bf16.vlgmr.msra.gmra.mxu1 %v418_v63 }
 0x43e   :  { %v501_v1 = vpop.f32.mrf.mxu1 }
 0x440   :  { %v692_v2 = vpop.f32.mrf.mxu1 }
 0x442   :  { %v504_v4 = vpop.f32.mrf.mxu1 }
 0x443   :  { %v509_v5 = vpack.c.bf16 %v504_v4, %v501_v1 }
 0x444   :  { %v693_v6 = vpop.f32.mrf.mxu1 }
 0x445   :  { %695 = vmatpush3.bf16.msra.mxu0 %v509_v5 }
 0x448   :  { %697 = vmatmul.mubr.msk.bf16.vlgmr.msra.gmra.mxu0 %vm197_vm1, %v508_v7 }
 0x508   :  { %v547_v8 = vpop.f32.mrf.mxu0 }
 0x509   :  { %v548_v9 = vadd.f32 %v547_v8, %v77_v0 }
 0x50a   :  { %v698_v10 = vpop.f32.mrf.mxu0 }
 0x50b   :  { %553 = vst [vmem:[%s923_s4] sm:$0xff] %v548_v9 }
 0x50c   :  { %v550_v11 = vpop.f32.mrf.mxu0 }
 0x50e   :  { %v699_v12 = vpop.f32.mrf.mxu0 }
 0x50f   :  { %558 = vsyncpa [#allocation3], 1 }
 0x510   :  { %559 = vsyncpa [#allocation5], 1 }
 0x511   :  { %560 = vsyncpa [#allocation8], 1 }

</bundles_post_ra>
